<compile_context>
chip_gen: v5e
topology: v5e:2x2
jax: 0.10.0
libtpu: 0.0.40
codegen_flags: <defaults>
</compile_context>

<pallas_src>
import functools

import jax
import jax.numpy as jnp
from jax.experimental import pallas as pl
from jax.experimental.pallas import tpu as pltpu


_VMEM_BUDGET_BYTES = 24 * 1024 * 1024   # target working-set for x/out buffers
_VMEM_LIMIT_CAP = 48 * 1024 * 1024      # safe on v7x (64 MiB physical VMEM)


def _tile_vmem_bytes(tile_b, in_dim, out_dim, param_bytes):
    """Rough VMEM footprint for one grid step (double-buffered by Pallas)."""
    x_bytes = 2 * 2 * tile_b * in_dim * 4        # two f32 inputs, 2 buffers each
    out_bytes = 2 * 2 * tile_b * out_dim * 4     # two f32 outputs, 2 buffers each
    h_bytes = 2 * tile_b * 128 * 4               # widest f32 intermediate (both branches)
    return x_bytes + out_bytes + h_bytes + param_bytes


def _choose_tile_b(batch, in_dim, out_dim, param_bytes):
    """MXU-friendly batch tile that keeps >=2 grid steps when possible and
    fits the VMEM budget (x is streamed as f32)."""
    if batch >= 1024:
        tile_b = 512
    elif batch >= 512:
        tile_b = 256
    elif batch >= 256:
        tile_b = 128
    else:
        tile_b = max(16, ((batch + 15) // 16) * 16)
    # Shrink (keeping multiples of 8 for sublane alignment) until it fits.
    while tile_b > 16 and _tile_vmem_bytes(tile_b, in_dim, out_dim,
                                           param_bytes) > _VMEM_BUDGET_BYTES:
        tile_b //= 2
    return max(tile_b, 16)


def siamese_mlp_kernel(x1_ref, x2_ref,
                       w1_ref, b1_ref, w2_ref, b2_ref,
                       w3_ref, b3_ref, w4_ref, b4_ref,
                       out1_ref, out2_ref):
    """Fused 4-layer shared-weight MLP applied to both siamese inputs.

    Each layer: y = relu(x @ W + b).  Operands hit the MXU in bf16 (in-kernel
    cast, so the f32 inputs are streamed from HBM exactly once), accumulation
    / bias / ReLU stay in f32.  Both branches use the SAME weights, matching
    the PyTorch forward (which only ever calls self.fc1).
    """
    layers = ((w1_ref, b1_ref), (w2_ref, b2_ref),
              (w3_ref, b3_ref), (w4_ref, b4_ref))

    def branch(x_ref, out_ref):
        h = x_ref[...].astype(jnp.bfloat16)       # in-register cast for the MXU
        for idx, (w_ref, b_ref) in enumerate(layers):
            h = jnp.dot(h, w_ref[...], preferred_element_type=jnp.float32)
            h = jnp.maximum(h + b_ref[...], 0.0)  # bias + ReLU in f32
            if idx + 1 < len(layers):
                h = h.astype(jnp.bfloat16)        # bf16 for the next MXU pass
        out_ref[...] = h.astype(out_ref.dtype)

    branch(x1_ref, out1_ref)
    branch(x2_ref, out2_ref)


def siamese_forward(input1, input2, params):
    """Equivalent of SiameseNetwork.forward: both inputs through the fc1 branch."""
    assert input1.shape == input2.shape
    batch, in_dim = input1.shape
    out_dim = params[-1][0].shape[1]

    # Weights -> bf16 (MXU-native), biases -> f32 (feed the f32 accumulator).
    flat_params = []
    param_bytes = 0
    for w, b in params:
        wb = w.astype(jnp.bfloat16)
        bb = b.astype(jnp.float32)
        flat_params += [wb, bb]
        param_bytes += wb.size * 2 + bb.size * 4

    tile_b = _choose_tile_b(batch, in_dim, out_dim, param_bytes)
    grid = (pl.cdiv(batch, tile_b),)  # ragged last tile handled by Pallas masking

    x_spec = pl.BlockSpec((tile_b, in_dim), lambda i: (i, 0))
    out_spec = pl.BlockSpec((tile_b, out_dim), lambda i: (i, 0))
    # Constant index_map -> weights/biases stay resident in VMEM across the grid.
    resident = lambda shape: pl.BlockSpec(shape, lambda i: (0, 0))

    vmem_need = _tile_vmem_bytes(tile_b, in_dim, out_dim, param_bytes)
    vmem_limit = min(_VMEM_LIMIT_CAP, max(32 * 1024 * 1024, 2 * vmem_need))

    out1, out2 = pl.pallas_call(
        siamese_mlp_kernel,
        out_shape=(jax.ShapeDtypeStruct((batch, out_dim), jnp.float32),
                   jax.ShapeDtypeStruct((batch, out_dim), jnp.float32)),
        grid_spec=pltpu.PrefetchScalarGridSpec(
            num_scalar_prefetch=0,
            grid=grid,
            in_specs=[x_spec, x_spec] + [resident(p.shape) for p in flat_params],
            out_specs=(out_spec, out_spec),
        ),
        compiler_params=pltpu.CompilerParams(
            dimension_semantics=("parallel",),
            vmem_limit_bytes=int(vmem_limit),
        ),
    )(input1, input2, *flat_params)
    return out1, out2


def init_linear(key, fan_in, fan_out):
    """Deterministic init mimicking PyTorch nn.Linear default (uniform +-1/sqrt(fan_in))."""
    kw, kb = jax.random.split(key)
    bound = 1.0 / jnp.sqrt(jnp.float32(fan_in))
    # Stored as (in, out) so the kernel computes x @ W + b.
    w = jax.random.uniform(kw, (fan_in, fan_out), jnp.float32, -bound, bound)
    b = jax.random.uniform(kb, (1, fan_out), jnp.float32, -bound, bound)
    return w, b


def init_params(key, input_dim):
    dims = [input_dim, 128, 64, 32, 16]
    keys = jax.random.split(key, len(dims) - 1)
    return tuple(init_linear(k, dims[i], dims[i + 1]) for i, k in enumerate(keys))


def reference_forward(x, params):
    """Pure-JAX reference mirroring the kernel math (bf16 operands, f32 accumulate)."""
    h = x.astype(jnp.bfloat16)
    n = len(params)
    for idx, (w, b) in enumerate(params):
        h = jnp.dot(h.astype(jnp.float32),
                    w.astype(jnp.bfloat16).astype(jnp.float32),
                    precision=jax.lax.Precision.HIGHEST)
        h = jnp.maximum(h + b.astype(jnp.float32), 0.0)
        if idx + 1 < n:
            h = h.astype(jnp.bfloat16)
    return h


if __name__ == "__main__":
    key = jax.random.PRNGKey(0)
    k_params, k_x1, k_x2 = jax.random.split(key, 3)

    # Small demo shapes consistent with the module.
    batch, input_dim = 2, 32
    params = init_params(k_params, input_dim)
    input1 = jax.random.normal(k_x1, (batch, input_dim), jnp.float32)
    input2 = jax.random.normal(k_x2, (batch, input_dim), jnp.float32)

    fwd = jax.jit(functools.partial(siamese_forward, params=params))
    out1, out2 = fwd(input1, input2)
    jax.block_until_ready((out1, out2))

    ref1 = reference_forward(input1, params)
    ref2 = reference_forward(input2, params)
    assert out1.shape == (batch, 16) and out2.shape == (batch, 16)
    assert jnp.allclose(out1, ref1, atol=1e-2, rtol=1e-2)
    assert jnp.allclose(out2, ref2, atol=1e-2, rtol=1e-2)

    # Second case: ragged batch + multi-step grid (exercises the cdiv tiling
    # path and the masked ragged-tile stores).
    batch2, input_dim2 = 300, 64
    params2 = init_params(jax.random.PRNGKey(1), input_dim2)
    x1b = jax.random.normal(jax.random.PRNGKey(2), (batch2, input_dim2), jnp.float32)
    x2b = jax.random.normal(jax.random.PRNGKey(3), (batch2, input_dim2), jnp.float32)
    o1, o2 = jax.jit(functools.partial(siamese_forward, params=params2))(x1b, x2b)
    jax.block_until_ready((o1, o2))
    assert o1.shape == (batch2, 16) and o2.shape == (batch2, 16)
    assert jnp.allclose(o1, reference_forward(x1b, params2), atol=1e-2, rtol=1e-2)
    assert jnp.allclose(o2, reference_forward(x2b, params2), atol=1e-2, rtol=1e-2)

    # TODO(synk): nn.CosineEmbeddingLoss and the unused fc2 branch are created
    # in __init__ but never used in forward(), so they are intentionally omitted.
    print("KERNEL_OK")
</pallas_src>

<mosaic_0001>
module attributes {stable_mosaic.version = 11 : i64} {
  func.func @siamese_mlp_kernel(%arg0: i32, %arg1: memref<16x32xf32, #tpu.memory_space<vmem>>, %arg2: memref<16x32xf32, #tpu.memory_space<vmem>>, %arg3: memref<32x128xbf16, #tpu.memory_space<vmem>>, %arg4: memref<1x128xf32, #tpu.memory_space<vmem>>, %arg5: memref<128x64xbf16, #tpu.memory_space<vmem>>, %arg6: memref<1x64xf32, #tpu.memory_space<vmem>>, %arg7: memref<64x32xbf16, #tpu.memory_space<vmem>>, %arg8: memref<1x32xf32, #tpu.memory_space<vmem>>, %arg9: memref<32x16xbf16, #tpu.memory_space<vmem>>, %arg10: memref<1x16xf32, #tpu.memory_space<vmem>>, %arg11: memref<16x16xf32, #tpu.memory_space<vmem>>, %arg12: memref<16x16xf32, #tpu.memory_space<vmem>>) attributes {dimension_semantics = [#tpu.dimension_semantics<parallel>], iteration_bounds = array<i64: 1>, scalar_prefetch = 0 : i64, scratch_operands = 0 : i64, tpu.core_type = #tpu.core_type<tc>, window_params = [{transform_indices = @transform_0, window_bounds = array<i64: 16, 32>}, {transform_indices = @transform_1, window_bounds = array<i64: 16, 32>}, {pipeline_mode = #tpu.pipeline_mode<synchronous>, transform_indices = @transform_2, window_bounds = array<i64: 32, 128>}, {pipeline_mode = #tpu.pipeline_mode<synchronous>, transform_indices = @transform_3, window_bounds = array<i64: 1, 128>}, {pipeline_mode = #tpu.pipeline_mode<synchronous>, transform_indices = @transform_4, window_bounds = array<i64: 128, 64>}, {pipeline_mode = #tpu.pipeline_mode<synchronous>, transform_indices = @transform_5, window_bounds = array<i64: 1, 64>}, {pipeline_mode = #tpu.pipeline_mode<synchronous>, transform_indices = @transform_6, window_bounds = array<i64: 64, 32>}, {pipeline_mode = #tpu.pipeline_mode<synchronous>, transform_indices = @transform_7, window_bounds = array<i64: 1, 32>}, {pipeline_mode = #tpu.pipeline_mode<synchronous>, transform_indices = @transform_8, window_bounds = array<i64: 32, 16>}, {pipeline_mode = #tpu.pipeline_mode<synchronous>, transform_indices = @transform_9, window_bounds = array<i64: 1, 16>}, {transform_indices = @transform_10, window_bounds = array<i64: 16, 16>}, {transform_indices = @transform_11, window_bounds = array<i64: 16, 16>}]} {
    %c0 = arith.constant 0 : index
    %c0_0 = arith.constant 0 : index
    %0 = vector.load %arg1[%c0, %c0_0] : memref<16x32xf32, #tpu.memory_space<vmem>>, vector<16x32xf32>
    %1 = arith.truncf %0 : vector<16x32xf32> to vector<16x32xbf16>
    %c0_1 = arith.constant 0 : index
    %c0_2 = arith.constant 0 : index
    %2 = vector.load %arg3[%c0_1, %c0_2] : memref<32x128xbf16, #tpu.memory_space<vmem>>, vector<32x128xbf16>
    %cst = arith.constant dense<0.000000e+00> : vector<16x128xf32>
    %3 = tpu.matmul %1, %2, %cst {dimension_numbers = #tpu.dot_dimension_numbers<[1], [0], [0], [1], [0, 0, 1, 1], [], []>} : vector<16x32xbf16>, vector<32x128xbf16>, vector<16x128xf32> -> vector<16x128xf32>
    %c0_3 = arith.constant 0 : index
    %c0_4 = arith.constant 0 : index
    %4 = vector.load %arg4[%c0_3, %c0_4] : memref<1x128xf32, #tpu.memory_space<vmem>>, vector<1x128xf32>
    %5 = vector.broadcast %4 : vector<1x128xf32> to vector<16x128xf32>
    %6 = arith.addf %3, %5 : vector<16x128xf32>
    %cst_5 = arith.constant 0.000000e+00 : f32
    %7 = vector.broadcast %cst_5 : f32 to vector<16x128xf32>
    %8 = arith.maximumf %6, %7 : vector<16x128xf32>
    %9 = arith.truncf %8 : vector<16x128xf32> to vector<16x128xbf16>
    %c0_6 = arith.constant 0 : index
    %c0_7 = arith.constant 0 : index
    %10 = vector.load %arg5[%c0_6, %c0_7] : memref<128x64xbf16, #tpu.memory_space<vmem>>, vector<128x64xbf16>
    %cst_8 = arith.constant dense<0.000000e+00> : vector<16x64xf32>
    %11 = tpu.matmul %9, %10, %cst_8 {dimension_numbers = #tpu.dot_dimension_numbers<[1], [0], [0], [1], [0, 0, 1, 1], [], []>} : vector<16x128xbf16>, vector<128x64xbf16>, vector<16x64xf32> -> vector<16x64xf32>
    %c0_9 = arith.constant 0 : index
    %c0_10 = arith.constant 0 : index
    %12 = vector.load %arg6[%c0_9, %c0_10] : memref<1x64xf32, #tpu.memory_space<vmem>>, vector<1x64xf32>
    %13 = vector.broadcast %12 : vector<1x64xf32> to vector<16x64xf32>
    %14 = arith.addf %11, %13 : vector<16x64xf32>
    %cst_11 = arith.constant 0.000000e+00 : f32
    %15 = vector.broadcast %cst_11 : f32 to vector<16x64xf32>
    %16 = arith.maximumf %14, %15 : vector<16x64xf32>
    %17 = arith.truncf %16 : vector<16x64xf32> to vector<16x64xbf16>
    %c0_12 = arith.constant 0 : index
    %c0_13 = arith.constant 0 : index
    %18 = vector.load %arg7[%c0_12, %c0_13] : memref<64x32xbf16, #tpu.memory_space<vmem>>, vector<64x32xbf16>
    %cst_14 = arith.constant dense<0.000000e+00> : vector<16x32xf32>
    %19 = tpu.matmul %17, %18, %cst_14 {dimension_numbers = #tpu.dot_dimension_numbers<[1], [0], [0], [1], [0, 0, 1, 1], [], []>} : vector<16x64xbf16>, vector<64x32xbf16>, vector<16x32xf32> -> vector<16x32xf32>
    %c0_15 = arith.constant 0 : index
    %c0_16 = arith.constant 0 : index
    %20 = vector.load %arg8[%c0_15, %c0_16] : memref<1x32xf32, #tpu.memory_space<vmem>>, vector<1x32xf32>
    %21 = vector.broadcast %20 : vector<1x32xf32> to vector<16x32xf32>
    %22 = arith.addf %19, %21 : vector<16x32xf32>
    %cst_17 = arith.constant 0.000000e+00 : f32
    %23 = vector.broadcast %cst_17 : f32 to vector<16x32xf32>
    %24 = arith.maximumf %22, %23 : vector<16x32xf32>
    %25 = arith.truncf %24 : vector<16x32xf32> to vector<16x32xbf16>
    %c0_18 = arith.constant 0 : index
    %c0_19 = arith.constant 0 : index
    %26 = vector.load %arg9[%c0_18, %c0_19] : memref<32x16xbf16, #tpu.memory_space<vmem>>, vector<32x16xbf16>
    %cst_20 = arith.constant dense<0.000000e+00> : vector<16x16xf32>
    %27 = tpu.matmul %25, %26, %cst_20 {dimension_numbers = #tpu.dot_dimension_numbers<[1], [0], [0], [1], [0, 0, 1, 1], [], []>} : vector<16x32xbf16>, vector<32x16xbf16>, vector<16x16xf32> -> vector<16x16xf32>
    %c0_21 = arith.constant 0 : index
    %c0_22 = arith.constant 0 : index
    %28 = vector.load %arg10[%c0_21, %c0_22] : memref<1x16xf32, #tpu.memory_space<vmem>>, vector<1x16xf32>
    %29 = vector.broadcast %28 : vector<1x16xf32> to vector<16x16xf32>
    %30 = arith.addf %27, %29 : vector<16x16xf32>
    %cst_23 = arith.constant 0.000000e+00 : f32
    %31 = vector.broadcast %cst_23 : f32 to vector<16x16xf32>
    %32 = arith.maximumf %30, %31 : vector<16x16xf32>
    %c0_24 = arith.constant 0 : index
    %c0_25 = arith.constant 0 : index
    %33 = vector.load %arg11[%c0_24, %c0_25] : memref<16x16xf32, #tpu.memory_space<vmem>>, vector<16x16xf32>
    tpu.vector_store %arg11[%c0_24, %c0_25], %32 {strides = array<i32>} : memref<16x16xf32, #tpu.memory_space<vmem>>, vector<16x16xf32>,
    %c0_26 = arith.constant 0 : index
    %c0_27 = arith.constant 0 : index
    %34 = vector.load %arg2[%c0_26, %c0_27] : memref<16x32xf32, #tpu.memory_space<vmem>>, vector<16x32xf32>
    %35 = arith.truncf %34 : vector<16x32xf32> to vector<16x32xbf16>
    %c0_28 = arith.constant 0 : index
    %c0_29 = arith.constant 0 : index
    %36 = vector.load %arg3[%c0_28, %c0_29] : memref<32x128xbf16, #tpu.memory_space<vmem>>, vector<32x128xbf16>
    %cst_30 = arith.constant dense<0.000000e+00> : vector<16x128xf32>
    %37 = tpu.matmul %35, %36, %cst_30 {dimension_numbers = #tpu.dot_dimension_numbers<[1], [0], [0], [1], [0, 0, 1, 1], [], []>} : vector<16x32xbf16>, vector<32x128xbf16>, vector<16x128xf32> -> vector<16x128xf32>
    %c0_31 = arith.constant 0 : index
    %c0_32 = arith.constant 0 : index
    %38 = vector.load %arg4[%c0_31, %c0_32] : memref<1x128xf32, #tpu.memory_space<vmem>>, vector<1x128xf32>
    %39 = vector.broadcast %38 : vector<1x128xf32> to vector<16x128xf32>
    %40 = arith.addf %37, %39 : vector<16x128xf32>
    %cst_33 = arith.constant 0.000000e+00 : f32
    %41 = vector.broadcast %cst_33 : f32 to vector<16x128xf32>
    %42 = arith.maximumf %40, %41 : vector<16x128xf32>
    %43 = arith.truncf %42 : vector<16x128xf32> to vector<16x128xbf16>
    %c0_34 = arith.constant 0 : index
    %c0_35 = arith.constant 0 : index
    %44 = vector.load %arg5[%c0_34, %c0_35] : memref<128x64xbf16, #tpu.memory_space<vmem>>, vector<128x64xbf16>
    %cst_36 = arith.constant dense<0.000000e+00> : vector<16x64xf32>
    %45 = tpu.matmul %43, %44, %cst_36 {dimension_numbers = #tpu.dot_dimension_numbers<[1], [0], [0], [1], [0, 0, 1, 1], [], []>} : vector<16x128xbf16>, vector<128x64xbf16>, vector<16x64xf32> -> vector<16x64xf32>
    %c0_37 = arith.constant 0 : index
    %c0_38 = arith.constant 0 : index
    %46 = vector.load %arg6[%c0_37, %c0_38] : memref<1x64xf32, #tpu.memory_space<vmem>>, vector<1x64xf32>
    %47 = vector.broadcast %46 : vector<1x64xf32> to vector<16x64xf32>
    %48 = arith.addf %45, %47 : vector<16x64xf32>
    %cst_39 = arith.constant 0.000000e+00 : f32
    %49 = vector.broadcast %cst_39 : f32 to vector<16x64xf32>
    %50 = arith.maximumf %48, %49 : vector<16x64xf32>
    %51 = arith.truncf %50 : vector<16x64xf32> to vector<16x64xbf16>
    %c0_40 = arith.constant 0 : index
    %c0_41 = arith.constant 0 : index
    %52 = vector.load %arg7[%c0_40, %c0_41] : memref<64x32xbf16, #tpu.memory_space<vmem>>, vector<64x32xbf16>
    %cst_42 = arith.constant dense<0.000000e+00> : vector<16x32xf32>
    %53 = tpu.matmul %51, %52, %cst_42 {dimension_numbers = #tpu.dot_dimension_numbers<[1], [0], [0], [1], [0, 0, 1, 1], [], []>} : vector<16x64xbf16>, vector<64x32xbf16>, vector<16x32xf32> -> vector<16x32xf32>
    %c0_43 = arith.constant 0 : index
    %c0_44 = arith.constant 0 : index
    %54 = vector.load %arg8[%c0_43, %c0_44] : memref<1x32xf32, #tpu.memory_space<vmem>>, vector<1x32xf32>
    %55 = vector.broadcast %54 : vector<1x32xf32> to vector<16x32xf32>
    %56 = arith.addf %53, %55 : vector<16x32xf32>
    %cst_45 = arith.constant 0.000000e+00 : f32
    %57 = vector.broadcast %cst_45 : f32 to vector<16x32xf32>
    %58 = arith.maximumf %56, %57 : vector<16x32xf32>
    %59 = arith.truncf %58 : vector<16x32xf32> to vector<16x32xbf16>
    %c0_46 = arith.constant 0 : index
    %c0_47 = arith.constant 0 : index
    %60 = vector.load %arg9[%c0_46, %c0_47] : memref<32x16xbf16, #tpu.memory_space<vmem>>, vector<32x16xbf16>
    %cst_48 = arith.constant dense<0.000000e+00> : vector<16x16xf32>
    %61 = tpu.matmul %59, %60, %cst_48 {dimension_numbers = #tpu.dot_dimension_numbers<[1], [0], [0], [1], [0, 0, 1, 1], [], []>} : vector<16x32xbf16>, vector<32x16xbf16>, vector<16x16xf32> -> vector<16x16xf32>
    %c0_49 = arith.constant 0 : index
    %c0_50 = arith.constant 0 : index
    %62 = vector.load %arg10[%c0_49, %c0_50] : memref<1x16xf32, #tpu.memory_space<vmem>>, vector<1x16xf32>
    %63 = vector.broadcast %62 : vector<1x16xf32> to vector<16x16xf32>
    %64 = arith.addf %61, %63 : vector<16x16xf32>
    %cst_51 = arith.constant 0.000000e+00 : f32
    %65 = vector.broadcast %cst_51 : f32 to vector<16x16xf32>
    %66 = arith.maximumf %64, %65 : vector<16x16xf32>
    %c0_52 = arith.constant 0 : index
    %c0_53 = arith.constant 0 : index
    %67 = vector.load %arg12[%c0_52, %c0_53] : memref<16x16xf32, #tpu.memory_space<vmem>>, vector<16x16xf32>
    tpu.vector_store %arg12[%c0_52, %c0_53], %66 {strides = array<i32>} : memref<16x16xf32, #tpu.memory_space<vmem>>, vector<16x16xf32>,
    return
  }
  func.func @transform_0(%arg0: i32) -> (i32, i32) {
    %c0_i32 = arith.constant 0 : i32
    %c0_i32_0 = arith.constant 0 : i32
    return %arg0, %c0_i32 : i32, i32
  }
  func.func @transform_1(%arg0: i32) -> (i32, i32) {
    %c0_i32 = arith.constant 0 : i32
    %c0_i32_0 = arith.constant 0 : i32
    return %arg0, %c0_i32 : i32, i32
  }
  func.func @transform_2(%arg0: i32) -> (i32, i32) {
    %c0_i32 = arith.constant 0 : i32
    %c0_i32_0 = arith.constant 0 : i32
    %c0_i32_1 = arith.constant 0 : i32
    return %c0_i32, %c0_i32_0 : i32, i32
  }
  func.func @transform_3(%arg0: i32) -> (i32, i32) {
    %c0_i32 = arith.constant 0 : i32
    %c0_i32_0 = arith.constant 0 : i32
    %c0_i32_1 = arith.constant 0 : i32
    return %c0_i32, %c0_i32_0 : i32, i32
  }
  func.func @transform_4(%arg0: i32) -> (i32, i32) {
    %c0_i32 = arith.constant 0 : i32
    %c0_i32_0 = arith.constant 0 : i32
    %c0_i32_1 = arith.constant 0 : i32
    return %c0_i32, %c0_i32_0 : i32, i32
  }
  func.func @transform_5(%arg0: i32) -> (i32, i32) {
    %c0_i32 = arith.constant 0 : i32
    %c0_i32_0 = arith.constant 0 : i32
    %c0_i32_1 = arith.constant 0 : i32
    return %c0_i32, %c0_i32_0 : i32, i32
  }
  func.func @transform_6(%arg0: i32) -> (i32, i32) {
    %c0_i32 = arith.constant 0 : i32
    %c0_i32_0 = arith.constant 0 : i32
    %c0_i32_1 = arith.constant 0 : i32
    return %c0_i32, %c0_i32_0 : i32, i32
  }
  func.func @transform_7(%arg0: i32) -> (i32, i32) {
    %c0_i32 = arith.constant 0 : i32
    %c0_i32_0 = arith.constant 0 : i32
    %c0_i32_1 = arith.constant 0 : i32
    return %c0_i32, %c0_i32_0 : i32, i32
  }
  func.func @transform_8(%arg0: i32) -> (i32, i32) {
    %c0_i32 = arith.constant 0 : i32
    %c0_i32_0 = arith.constant 0 : i32
    %c0_i32_1 = arith.constant 0 : i32
    return %c0_i32, %c0_i32_0 : i32, i32
  }
  func.func @transform_9(%arg0: i32) -> (i32, i32) {
    %c0_i32 = arith.constant 0 : i32
    %c0_i32_0 = arith.constant 0 : i32
    %c0_i32_1 = arith.constant 0 : i32
    return %c0_i32, %c0_i32_0 : i32, i32
  }
  func.func @transform_10(%arg0: i32) -> (i32, i32) {
    %c0_i32 = arith.constant 0 : i32
    %c0_i32_0 = arith.constant 0 : i32
    return %arg0, %c0_i32 : i32, i32
  }
  func.func @transform_11(%arg0: i32) -> (i32, i32) {
    %c0_i32 = arith.constant 0 : i32
    %c0_i32_0 = arith.constant 0 : i32
    return %arg0, %c0_i32 : i32, i32
  }
}

</mosaic_0001>

<bundles_post_ra>
// kernel: siamese_forward.1
= control target key start
LH: loop header
LB: loop body
LE: loop exit
PB: predicated region body
PF: predicated region fallthrough
CT: control target
= control target key end

     0   :  { %17 = vsyncpa [#allocation3], 0  ;;  %s1235_s0 = inlined_call_operand.hbm [shape: f32[2,32], index: 0, kind: input, shape index: {}]   ;;  %s1236_s1 = inlined_call_operand.hbm [shape: f32[2,32], index: 1, kind: input, shape index: {}]   ;;  %s1237_s2 = inlined_call_operand.hbm [shape: bf16[32,128], index: 2, kind: input, shape index: {}]   ;;  %s1238_s3 = inlined_call_operand.hbm [shape: f32[1,128], index: 3, kind: input, shape index: {}]   ;;  %s1239_s4 = inlined_call_operand.hbm [shape: bf16[128,64], index: 4, kind: input, shape index: {}]   ;;  %s1240_s5 = inlined_call_operand.hbm [shape: f32[1,64], index: 5, kind: input, shape index: {}]   ;;  %s1241_s6 = inlined_call_operand.hbm [shape: bf16[64,32], index: 6, kind: input, shape index: {}]   ;;  %s1242_s7 = inlined_call_operand.vmem [shape: f32[1,32], index: 7, kind: input, shape index: {}]   ;;  %s1243_s8 = inlined_call_operand.hbm [shape: bf16[32,16], index: 8, kind: input, shape index: {}]   ;;  %s1244_s9 = inlined_call_operand.vmem [shape: f32[1,16], index: 9, kind: input, shape index: {}]   ;;  %s1245_s10 = inlined_call_operand.hbm [shape: f32[2,16], index: 10, kind: output, shape index: {0}]   ;;  %s1246_s11 = inlined_call_operand.hbm [shape: f32[2,16], index: 11, kind: output, shape index: {1}]  }
   0x1   :  { %18 = vsyncpa [#allocation6], 0 }
   0x2   :  { %19 = vsyncpa [#allocation9], 0 }
   0x3   :  { %20 = vsyncpa [#allocation12], 0 }
   0x4   :  { %21 = vsyncpa [#allocation15], 0 }
   0x5   :  { %22 = vsyncpa [#allocation4], 0 }
   0x6   :  { %23 = vsyncpa [#allocation18], 0 }
   0x7   :  { %27 = vsyncadd [#allocation3], 224  ;;  %s28_s19 = sshll.u32 %s1235_s0, 4  ;;  %s1097_s20 = smov [#allocation2]   ;;  %s29_s19 = int_to_ptr.hbm [resolvable:$true] %s28_s19 }
   0x8   :  { %s30_s21 = sshll.u32 %s1097_s20, 4  ;;  %s1098_s22 = smov 32   ;;  %s31_s21 = int_to_ptr.vmem [resolvable:$true] %s30_s21 }
   0x9   :  { %s1099_s23 = smov 2  }
   0xa   :  { %36 = dma.hbm_to_vmem [thread:$0]  %s29_s19, 32, %s31_s21, [#allocation3], %s1098_s22, %s1098_s22, %s1099_s23  }
   0xb   :  { %40 = vsyncadd [#allocation6], 224  ;;  %s41_s26 = sshll.u32 %s1236_s1, 4  ;;  %s1100_s27 = smov [#allocation5]   ;;  %s42_s26 = int_to_ptr.hbm [resolvable:$true] %s41_s26 }
   0xc   :  { %s43_s28 = sshll.u32 %s1100_s27, 4  ;;  %s68_s30 = sshll.u32 %s1238_s3, 4  ;;  %s44_s28 = int_to_ptr.vmem [resolvable:$true] %s43_s28  ;;  %s69_s30 = int_to_ptr.hbm [resolvable:$true] %s68_s30 }
   0xd   :  { %49 = dma.hbm_to_vmem [thread:$0]  %s42_s26, 32, %s44_s28, [#allocation6], %s1098_s22, %s1098_s22, %s1099_s23  }
   0xe   :  { %s1101_s12 = smov [#allocation8]   ;;  %s92_s16 = sshll.u32 %s1240_s5, 4  ;;  %s93_s16 = int_to_ptr.hbm [resolvable:$true] %s92_s16 }
   0xf   :  { %s70_s13 = sshll.u32 %s1101_s12, 4  ;;  %s54_s18 = sshll.u32 %s1237_s2, 4  ;;  %s71_s13 = int_to_ptr.vmem [resolvable:$true] %s70_s13  ;;  %s55_s18 = int_to_ptr.hbm [resolvable:$true] %s54_s18 }
  0x10   :  { %73 = dma.hbm_to_vmem [thread:$0]  %s69_s30, 16, %s71_s13, [#allocation9]  }
  0x11   :  { %s1102_s19 = smov [#allocation11]   ;;  %s1103_s20 = smov [#allocation7]  }
  0x12   :  { %s94_s3 = sshll.u32 %s1102_s19, 4  ;;  %s56_s21 = sshll.u32 %s1103_s20, 4  ;;  %s95_s3 = int_to_ptr.vmem [resolvable:$true] %s94_s3  ;;  %s57_s21 = int_to_ptr.vmem [resolvable:$true] %s56_s21 }
  0x13   :  { %97 = dma.hbm_to_vmem [thread:$0]  %s93_s16, 16, %s95_s3, [#allocation12]  }
  0x14   :  { %s1104_s24 = smov 64   ;;  %s1105_s25 = smov 4  }
  0x15   :  { %62 = dma.hbm_to_vmem [thread:$0]  %s55_s18, 256, %s57_s21, [#allocation6], %s1104_s24, %s1104_s24, %s1105_s25  }
  0x16   :  { %s78_s27 = sshll.u32 %s1239_s4, 4  ;;  %s1106_s28 = smov [#allocation10]   ;;  %s79_s27 = int_to_ptr.hbm [resolvable:$true] %s78_s27 }
  0x17   :  { %s80_s0 = sshll.u32 %s1106_s28, 4  ;;  %s102_s30 = sshll.u32 %s1241_s6, 4  ;;  %s81_s0 = int_to_ptr.vmem [resolvable:$true] %s80_s0  ;;  %s103_s30 = int_to_ptr.hbm [resolvable:$true] %s102_s30 }
  0x18   :  { %86 = dma.hbm_to_vmem [thread:$0]  %s79_s27, 1024, %s81_s0, [#allocation9], %s1104_s24, %s1104_s24, %s1105_s25  }
  0x19   :  { %s1107_s12 = smov [#allocation13]   ;;  %s117_s16 = sshll.u32 %s1243_s8, 4  ;;  %s118_s16 = int_to_ptr.hbm [resolvable:$true] %s117_s16 }
  0x1a   :  { %s104_s13 = sshll.u32 %s1107_s12, 4  ;;  %s1108_s4 = smov [#allocation14]   ;;  %s105_s13 = int_to_ptr.vmem [resolvable:$true] %s104_s13 }
  0x1b   :  { %110 = dma.hbm_to_vmem [thread:$0]  %s103_s30, 512, %s105_s13, [#allocation12], %s1104_s24, %s1104_s24, %s1105_s25  }
  0x1c   :  { %s119_s1 = sshll.u32 %s1108_s4, 4  ;;  %s120_s1 = int_to_ptr.vmem [resolvable:$true] %s119_s1 }
  0x1d   :  { %125 = dma.hbm_to_vmem [thread:$0]  %s118_s16, 256, %s120_s1, [#allocation15], %s1104_s24, %s1104_s24, %s1105_s25  }
  0x1e   :  { %1083 = dma.done.wait [#allocation3], 256  }
  0x1f   :  { %1084 = vsyncadd [#allocation3], 4294967040 }
  0x20   :  { %1085 = dma.done.wait [#allocation6], 512  }
  0x21   :  { %1086 = vsyncadd [#allocation6], 4294966784 }
  0x22   :  { %1087 = dma.done.wait [#allocation9], 1040  }
  0x23   :  { %1088 = vsyncadd [#allocation9], 4294966256 }
  0x24   :  { %1089 = dma.done.wait [#allocation12], 528  }
  0x25   :  { %1090 = vsyncadd [#allocation12], 4294966768 }
  0x26   :  { %1091 = dma.done.wait [#allocation15], 256  }
  0x27   :  { %1092 = vsyncadd [#allocation15], 4294967040  ;;  %v790_v0 = vld [vmem:[#allocation7 + $0x8] sm:$0xff]  ;;  %v789_v1 = vld [vmem:[#allocation7] sm:$0xff]  ;;  %vm184_vm0 = vcmask 261120   ;;  %vm326_vm1 = vcmask 523264  }
  0x28   :  { %v798_v2 = vld [vmem:[#allocation10 + $0x38] sm:$0xff]  ;;  %194 = vmatpush.bf16.msra.mxu0 %v790_v0  ;;  %v161_v3 = vld [vmem:[#allocation2] sm:$0xff]  ;;  %v795_v8 = vld [vmem:[#allocation10 + $0x20] sm:$0xff]  ;;  %vm386_vm2 = vcmask 130048  }
  0x29   :  { %v162_v4 = vld [vmem:[#allocation2 + $0x8] sm:$0xff]  ;;  %273 = vmatpush.bf16.msra.mxu1 %v798_v2  ;;  %v796_v7 = vld [vmem:[#allocation10 + $0x28] sm:$0xff]  ;;  %v791_v12 = vld [vmem:[#allocation10] sm:$0xff] }
  0x2a   :  { %v797_v5 = vld [vmem:[#allocation10 + $0x30] sm:$0xff]  ;;  %v163_v6 = vpack.c.bf16 %v162_v4, %v161_v3  ;;  %v794_v9 = vld [vmem:[#allocation10 + $0x18] sm:$0xff]  ;;  %v792_v11 = vld [vmem:[#allocation10 + $0x8] sm:$0xff] }
  0x2b   :  { %v793_v10 = vld [vmem:[#allocation10 + $0x10] sm:$0xff]  ;;  %v835_v14 = vld [vmem:[#allocation8] ss:$0 sm:$0xff]  ;;  %v799_v24 = vld [vmem:[#allocation13] sm:$0xff] }
  0x2c   :  { %195 = vmatpush.bf16.msra.mxu0 %v789_v1  ;;  %v802_v21 = vld [vmem:[#allocation13 + $0x18] sm:$0xff]  ;;  %v801_v22 = vld [vmem:[#allocation13 + $0x10] sm:$0xff]  ;;  %v800_v23 = vld [vmem:[#allocation13 + $0x8] sm:$0xff] }
  0x2d   :  { %274 = vmatpush.bf16.msra.mxu1 %v797_v5  ;;  %334 = vmatpush.bf16.msra.mxu2 %v802_v21  ;;  %v806_v25 = vld [vmem:[#allocation7 + $0x8] sm:$0xff]  ;;  %v804_v26 = vld [vmem:[#allocation14 + $0x8] sm:$0xff]  ;;  %v389_v28 = vld [vmem:[#allocation5] sm:$0xff] }
  0x2e   :  { %v805_v27 = vld [vmem:[#allocation7] sm:$0xff]  ;;  %v390_v29 = vld [vmem:[#allocation5 + $0x8] sm:$0xff]  ;;  %376 = vmatpush.bf16.msra.mxu3 %v804_v26  ;;  %v836_v33 = vld [vmem:[#allocation11] ss:$0 sm:$0xff] }
  0x2f   :  { %663 = vmatmul.msk.bf16.vlgmr.msra.gmra.mxu0 %vm184_vm0, %v163_v6  ;;  %v803_v30 = vld [vmem:[#allocation14] sm:$0xff]  ;;  %v391_v31 = vpack.c.bf16 %v390_v29, %v389_v28  ;;  %v814_v40 = vld [vmem:[#allocation10 + $0x38] sm:$0xff]  ;;  %v813_v41 = vld [vmem:[#allocation10 + $0x30] sm:$0xff] }
  0x30   :  { %421 = vmatpush.bf16.msrb.mxu0 %v806_v25  ;;  %v812_v42 = vld [vmem:[#allocation10 + $0x28] sm:$0xff]  ;;  %v811_v43 = vld [vmem:[#allocation10 + $0x20] sm:$0xff]  ;;  %v810_v44 = vld [vmem:[#allocation10 + $0x18] sm:$0xff] }
  0x31   :  { %275 = vmatpush.bf16.msra.mxu1 %v796_v7  ;;  %335 = vmatpush.bf16.msra.mxu2 %v801_v22  ;;  %v809_v45 = vld [vmem:[#allocation10 + $0x10] sm:$0xff]  ;;  %v808_v46 = vld [vmem:[#allocation10 + $0x8] sm:$0xff]  ;;  %v807_v47 = vld [vmem:[#allocation10] sm:$0xff] }
  0x32   :  { %377 = vmatpush.bf16.msra.mxu3 %v803_v30  ;;  %v837_v49 = vld [vmem:[%s1242_s7] ss:$0 sm:$0xff]  ;;  %v838_v57 = vld [vmem:[#allocation8] ss:$0 sm:$0xff]  ;;  %v817_v1 = vld [vmem:[#allocation13 + $0x10] sm:$0xff] }
  0x33   :  { %v818_v0 = vld [vmem:[#allocation13 + $0x18] sm:$0xff]  ;;  %v816_v2 = vld [vmem:[#allocation13 + $0x8] sm:$0xff]  ;;  %v815_v3 = vld [vmem:[#allocation13] sm:$0xff] }
  0x34   :  { %422 = vmatpush.bf16.msrb.mxu0 %v805_v27  ;;  %v839_v4 = vld [vmem:[%s1244_s9] ss:$0 sm:$0xff] }
  0x35   :  { %276 = vmatpush.bf16.msra.mxu1 %v795_v8  ;;  %336 = vmatpush.bf16.msra.mxu2 %v800_v23  ;;  %v820_v5 = vld [vmem:[#allocation14 + $0x8] sm:$0xff] }
  0x36   :  { %500 = vmatpush.bf16.msrb.mxu3 %v814_v40  ;;  %v841_v22 = vld [vmem:[%s1242_s7] ss:$0 sm:$0xff] }
  0x37   :  { %v842_v29 = vld [vmem:[%s1244_s9] ss:$0 sm:$0xff] }
  0x38   :  { %602 = vmatpush.bf16.msra.mxu0 %v820_v5 }
  0x39   :  { %277 = vmatpush.bf16.msra.mxu1 %v794_v9  ;;  %337 = vmatpush.bf16.msra.mxu2 %v799_v24 }
  0x3a   :  { %501 = vmatpush.bf16.msrb.mxu3 %v813_v41 }
  0x3d   :  { %278 = vmatpush.bf16.msra.mxu1 %v793_v10  ;;  %560 = vmatpush.bf16.msrb.mxu2 %v818_v0 }
  0x3e   :  { %502 = vmatpush.bf16.msrb.mxu3 %v812_v42 }
  0x3f   :  { %730 = vmatmul.msk.bf16.vlgmr.msrb.gmra.mxu0 %vm184_vm0, %v391_v31 }
  0x41   :  { %279 = vmatpush.bf16.msra.mxu1 %v792_v11  ;;  %561 = vmatpush.bf16.msrb.mxu2 %v817_v1 }
  0x42   :  { %503 = vmatpush.bf16.msrb.mxu3 %v811_v43 }
  0x45   :  { %280 = vmatpush.bf16.msra.mxu1 %v791_v12  ;;  %562 = vmatpush.bf16.msrb.mxu2 %v816_v2 }
  0x46   :  { %504 = vmatpush.bf16.msrb.mxu3 %v810_v44 }
  0x49   :  { %563 = vmatpush.bf16.msrb.mxu2 %v815_v3 }
  0x4a   :  { %505 = vmatpush.bf16.msrb.mxu3 %v809_v45 }
  0x4e   :  { %506 = vmatpush.bf16.msrb.mxu3 %v808_v46 }
  0x52   :  { %507 = vmatpush.bf16.msrb.mxu3 %v807_v47 }
  0xac   :  { %v197_v13 = vpop.f32.mrf.mxu0 }
  0xad   :  { %v198_v15 = vadd.f32 %v835_v14, %v197_v13  ;;  %v840_v13 = vld [vmem:[#allocation11] ss:$0 sm:$0xff] }
  0xaf   :  { %v202_v18 = vmax.f32 %v198_v15, 0.0 }
  0xb4   :  { %v199_v16 = vpop.f32.mrf.mxu0 }
  0xb5   :  { %v200_v17 = vadd.f32 %v835_v14, %v199_v16 }
  0xb7   :  { %v203_v19 = vmax.f32 %v200_v17, 0.0 }
  0xb9   :  { %v204_v20 = vpack.c.bf16 %v203_v19, %v202_v18 }
  0xbb   :  { %281 = vmatmul.bf16.vlgmr.msra.gmra.mxu1 %v204_v20  ;;  %v819_v20 = vld [vmem:[#allocation14] sm:$0xff] }
  0xbc   :  { %v424_v52 = vpop.f32.mrf.mxu0  ;;  %603 = vmatpush.bf16.msra.mxu0 %v819_v20 }
  0xbd   :  { %v425_v59 = vadd.f32 %v838_v57, %v424_v52 }
  0xbf   :  { %v429_v61 = vmax.f32 %v425_v59, 0.0 }
  0xc4   :  { %v426_v58 = vpop.f32.mrf.mxu0 }
  0xc5   :  { %v427_v60 = vadd.f32 %v838_v57, %v426_v58 }
  0xc7   :  { %v430_v62 = vmax.f32 %v427_v60, 0.0 }
  0xc9   :  { %v431_v63 = vpack.c.bf16 %v430_v62, %v429_v61 }
 0x138   :  { %v282_v32 = vpop.f32.mrf.mxu1 }
 0x139   :  { %v283_v34 = vadd.f32 %v836_v33, %v282_v32 }
 0x13b   :  { %v287_v37 = vmax.f32 %v283_v34, 0.0 }
 0x140   :  { %v284_v35 = vpop.f32.mrf.mxu1 }
 0x141   :  { %v285_v36 = vadd.f32 %v836_v33, %v284_v35 }
 0x143   :  { %v288_v38 = vmax.f32 %v285_v36, 0.0 }
 0x145   :  { %v289_v39 = vpack.c.bf16 %v288_v38, %v287_v37 }
 0x147   :  { %712 = vmatmul.msk.bf16.vlgmr.msra.gmra.mxu2 %vm326_vm1, %v289_v39 }
 0x1ca   :  { %v339_v48 = vpop.f32.mrf.mxu2 }
 0x1cb   :  { %v340_v50 = vadd.f32 %v837_v49, %v339_v48 }
 0x1cd   :  { %v344_v54 = vmax.f32 %v340_v50, 0.0 }
 0x1d2   :  { %v341_v51 = vpop.f32.mrf.mxu2 }
 0x1d3   :  { %v342_v53 = vadd.f32 %v837_v49, %v341_v51 }
 0x1d5   :  { %v345_v55 = vmax.f32 %v342_v53, 0.0 }
 0x1d7   :  { %v346_v56 = vpack.c.bf16 %v345_v55, %v344_v54 }
 0x1d9   :  { %721 = vmatmul.msk.bf16.vlgmr.msra.gmra.mxu3 %vm184_vm0, %v346_v56 }
 0x1e9   :  { %508 = vmatmul.bf16.vlgmr.msrb.gmra.mxu3 %v431_v63 }
 0x25c   :  { %v379_v6 = vpop.f32.mrf.mxu3 }
 0x25d   :  { %v380_v7 = vadd.f32 %v839_v4, %v379_v6 }
 0x25f   :  { %v384_v8 = vmax.f32 %v380_v7, 0.0 }
 0x261   :  { %387 = vst.msk [vmem:[#allocation16] sm:$0xff] %vm386_vm2, %v384_v8 }
 0x264   :  { %v381_v9 = vpop.f32.mrf.mxu3 }
 0x265   :  { %v382_v10 = vadd.f32 %v839_v4, %v381_v9 }
 0x267   :  { %v385_v11 = vmax.f32 %v382_v10, 0.0 }
 0x269   :  { %388 = vst.msk [vmem:[#allocation16 + $0x8] sm:$0xff] %vm386_vm2, %v385_v11 }
 0x26c   :  { %v509_v12 = vpop.f32.mrf.mxu3 }
 0x26d   :  { %v510_v14 = vadd.f32 %v840_v13, %v509_v12 }
 0x26f   :  { %v514_v17 = vmax.f32 %v510_v14, 0.0 }
 0x274   :  { %v511_v15 = vpop.f32.mrf.mxu3 }
 0x275   :  { %v512_v16 = vadd.f32 %v840_v13, %v511_v15 }
 0x277   :  { %v515_v18 = vmax.f32 %v512_v16, 0.0 }
 0x279   :  { %v516_v19 = vpack.c.bf16 %v515_v18, %v514_v17 }
 0x27b   :  { %779 = vmatmul.msk.bf16.vlgmr.msrb.gmra.mxu2 %vm326_vm1, %v516_v19 }
 0x2fe   :  { %v565_v21 = vpop.f32.mrf.mxu2 }
 0x2ff   :  { %v566_v23 = vadd.f32 %v841_v22, %v565_v21 }
 0x301   :  { %v570_v26 = vmax.f32 %v566_v23, 0.0 }
 0x306   :  { %v567_v24 = vpop.f32.mrf.mxu2 }
 0x307   :  { %v568_v25 = vadd.f32 %v841_v22, %v567_v24 }
 0x309   :  { %v571_v27 = vmax.f32 %v568_v25, 0.0 }
 0x30b   :  { %v572_v28 = vpack.c.bf16 %v571_v27, %v570_v26 }
 0x30d   :  { %788 = vmatmul.msk.bf16.vlgmr.msra.gmra.mxu0 %vm184_vm0, %v572_v28 }
 0x38a   :  { %v605_v30 = vpop.f32.mrf.mxu0 }
 0x38b   :  { %v606_v31 = vadd.f32 %v842_v29, %v605_v30 }
 0x38d   :  { %v610_v32 = vmax.f32 %v606_v31, 0.0 }
 0x38f   :  { %612 = vst.msk [vmem:[#allocation17] sm:$0xff] %vm386_vm2, %v610_v32 }
 0x392   :  { %v607_v33 = vpop.f32.mrf.mxu0 }
 0x393   :  { %v608_v34 = vadd.f32 %v842_v29, %v607_v33 }
 0x395   :  { %v611_v35 = vmax.f32 %v608_v34, 0.0 }
 0x397   :  { %613 = vst.msk [vmem:[#allocation17 + $0x8] sm:$0xff] %vm386_vm2, %v611_v35 }
 0x398   :  { %617 = vsyncadd [#allocation4], 224  ;;  %s620_s25 = sshll.u32 %s1245_s10, 4  ;;  %s1109_s26 = smov [#allocation16]   ;;  %s621_s25 = int_to_ptr.hbm [resolvable:$true] %s620_s25 }
 0x399   :  { %s618_s5 = sshll.u32 %s1109_s26, 4  ;;  %s619_s5 = int_to_ptr.vmem [resolvable:$true] %s618_s5 }
 0x39a   :  { %626 = dma.vmem_to_hbm [thread:$0]  %s619_s5, 32, %s621_s25, [#allocation4], %s1098_s22, %s1098_s22, %s1099_s23  }
 0x39b   :  { %630 = vsyncadd [#allocation18], 224  ;;  %s633_s28 = sshll.u32 %s1246_s11, 4  ;;  %s1110_s0 = smov [#allocation17]   ;;  %s634_s28 = int_to_ptr.hbm [resolvable:$true] %s633_s28 }
 0x39c   :  { %s631_s2 = sshll.u32 %s1110_s0, 4  ;;  %s632_s2 = int_to_ptr.vmem [resolvable:$true] %s631_s2 }
 0x39d   :  { %639 = dma.vmem_to_hbm [thread:$0]  %s632_s2, 32, %s634_s28, [#allocation18], %s1098_s22, %s1098_s22, %s1099_s23  }
 0x39e   :  { %1093 = dma.done.wait [#allocation4], 256  }
 0x39f   :  { %1094 = vsyncadd [#allocation4], 4294967040 }
 0x3a0   :  { %1095 = dma.done.wait [#allocation18], 256  }
 0x3a1   :  { %1096 = vsyncadd [#allocation18], 4294967040 }
 0x3a2   :  { %648 = vsyncpa [#allocation3], 1 }
 0x3a3   :  { %649 = vsyncpa [#allocation6], 1 }
 0x3a4   :  { %650 = vsyncpa [#allocation9], 1 }
 0x3a5   :  { %651 = vsyncpa [#allocation12], 1 }
 0x3a6   :  { %652 = vsyncpa [#allocation15], 1 }
 0x3a7   :  { %653 = vsyncpa [#allocation4], 1 }
 0x3a8   :  { %654 = vsyncpa [#allocation18], 1 }

</bundles_post_ra>
